<compile_context>
chip_gen: v7x
topology: tpu7x:2x2x1
jax: 0.10.0
libtpu: 0.0.40
codegen_flags: <defaults>
</compile_context>

<pallas_src>
import math
from functools import partial

import jax
import jax.numpy as jnp
from jax.experimental import pallas as pl
from jax.experimental.pallas import tpu as pltpu

# ----------------------------- config (small) -------------------------------
CFG = dict(
    hidden_size=32,
    num_attention_heads=4,
    num_key_value_heads=2,
    head_dim=8,
    intermediate_size=64,
    rms_norm_eps=1e-6,
    rope_theta=10000.0,
)

NEG_INF = -1e9


# ------------------------------ kernel helpers ------------------------------
def _rmsnorm(x, w, eps):
    # x: (R, H), w: (1, H)
    var = jnp.mean(x * x, axis=-1, keepdims=True)
    return x * jax.lax.rsqrt(var + eps) * w


# -------------------- fused decoder-layer kernel (single step) ---------------
def layer_kernel(x_ref, ln1_ref, wqkv_ref, cos_ref, sin_ref, mask_ref,
                 wo_ref, ln2_ref, wgu_ref, wd_ref, out_ref, *,
                 eps, nh, nkv, d, rows, i_dim):
    hq = nh * d
    hkv = nkv * d
    n_rep = nh // nkv
    half = d // 2
    scale = 1.0 / math.sqrt(d)

    x = x_ref[...]                                              # (B*S, H)

    # ---- input RMSNorm + fused QKV projection (one MXU push, all batches) ----
    xn = _rmsnorm(x, ln1_ref[...], eps)
    qkv = jnp.dot(xn, wqkv_ref[...],
                  preferred_element_type=jnp.float32)           # (B*S, Hq+2*Hkv)

    cos_st = cos_ref[...]            # (nh*B*S, D)  head-major tiled cos
    sin_st = sin_ref[...]            # (nh*B*S, D)  first half pre-negated
    cos2d = cos_st[:rows, :]         # (B*S, D)     single-copy view for K
    sin2d = sin_st[:rows, :]

    def rope(t, c, s_signed):
        # rotate_half folded into pre-negated sin: t*cos + swap(t)*sin_signed
        t_sw = jnp.concatenate([t[:, half:], t[:, :half]], axis=-1)
        return t * c + t_sw * s_signed

    # ---- stack heads along sublanes: row order = (head, batch, seq) ----
    q_st = jnp.concatenate([qkv[:, h * d:(h + 1) * d] for h in range(nh)],
                           axis=0)                              # (nh*B*S, D)
    q_st = rope(q_st, cos_st, sin_st)

    # RoPE(K) once per KV group, then duplicate row blocks for GQA.
    k_g = [rope(qkv[:, hq + g * d: hq + (g + 1) * d], cos2d, sin2d)
           for g in range(nkv)]
    v_g = [qkv[:, hq + hkv + g * d: hq + hkv + (g + 1) * d] for g in range(nkv)]
    k_st = jnp.concatenate([k_g[h // n_rep] for h in range(nh)], axis=0)
    v_st = jnp.concatenate([v_g[h // n_rep] for h in range(nh)], axis=0)

    # ---- ALL (batch, head) score matmuls fused into ONE MXU op ----
    sc = jax.lax.dot_general(q_st, k_st, (((1,), (1,)), ((), ())),
                             preferred_element_type=jnp.float32) * scale
    sc = sc + mask_ref[...]          # block-diag(head,batch) + causal + padding

    m = jnp.max(sc, axis=-1, keepdims=True)
    p = jnp.exp(sc - m)
    denom = jnp.sum(p, axis=-1, keepdims=True)
    p = p * pl.reciprocal(denom, approx=True)

    # ---- ALL PV matmuls fused into ONE MXU op ----
    ctx_st = jnp.dot(p, v_st, preferred_element_type=jnp.float32)  # (nh*B*S, D)

    # un-stack heads back to lanes, then a single O-projection matmul
    attn = jnp.concatenate(
        [ctx_st[h * rows:(h + 1) * rows, :] for h in range(nh)], axis=1)  # (B*S, Hq)

    h_res = x + jnp.dot(attn, wo_ref[...], preferred_element_type=jnp.float32)
    hn = _rmsnorm(h_res, ln2_ref[...], eps)

    # ---- fused gate/up + SwiGLU + down ----
    gu = jnp.dot(hn, wgu_ref[...], preferred_element_type=jnp.float32)  # (B*S, 2I)
    gate = gu[:, :i_dim]
    up = gu[:, i_dim:]
    act = gate * jax.nn.sigmoid(gate)                                   # SiLU
    mlp = jnp.dot(act * up, wd_ref[...], preferred_element_type=jnp.float32)

    out_ref[...] = h_res + mlp


# --------------------------------- wrapper ----------------------------------
def decoder_layer_forward(params, hidden_states, position_embeddings,
                          cache_position, attention_mask, position_ids):
    """Mirrors MistralDecoderLayer.forward; returns new hidden_states."""
    # TODO(synk): DynamicCache present-KV is not materialized as an output;
    # only the layer's hidden_states output is returned.
    del position_ids  # positions already folded into cos/sin (glue)
    cos, sin = position_embeddings
    B, S, H = hidden_states.shape
    NH = CFG["num_attention_heads"]
    NKV = CFG["num_key_value_heads"]
    D = CFG["head_dim"]
    I = CFG["intermediate_size"]
    eps = CFG["rms_norm_eps"]
    Hq, Hkv = NH * D, NKV * D
    HQKV = Hq + 2 * Hkv
    R = B * S            # flattened rows
    RS = NH * R          # stacked (head, batch, seq) rows
    half = D // 2

    x2d = hidden_states.reshape(R, H)

    # RoPE tables in the stacked layout; rotate_half's sign folded into sin.
    cos2d = cos.reshape(R, D)
    sin2d = sin.reshape(R, D)
    sin_signed = jnp.concatenate([-sin2d[:, :half], sin2d[:, half:]], axis=1)
    cos_st = jnp.tile(cos2d, (NH, 1))          # (NH*B*S, D)
    sin_st = jnp.tile(sin_signed, (NH, 1))     # (NH*B*S, D)

    # Additive mask for the stacked layout: row r=(h,b,sq), col c=(h',b',sk)
    # valid iff same head, same batch, sk <= cache_position[sq], key not padded.
    r_idx = jnp.arange(RS)
    h_i = r_idx // R
    b_i = (r_idx % R) // S
    s_i = r_idx % S
    same_blk = (h_i[:, None] == h_i[None, :]) & (b_i[:, None] == b_i[None, :])
    qpos = cache_position.astype(jnp.int32)[s_i]                       # (RS,)
    causal = s_i[None, :] <= qpos[:, None]
    key_keep = (attention_mask.astype(jnp.float32)[b_i, s_i] > 0.5)[None, :]
    ok = same_blk & causal & key_keep
    mask_add = jnp.where(ok, 0.0, NEG_INF).astype(jnp.float32)         # (RS, RS)

    out2d = pl.pallas_call(
        partial(layer_kernel, eps=eps, nh=NH, nkv=NKV, d=D, rows=R, i_dim=I),
        out_shape=jax.ShapeDtypeStruct((R, H), jnp.float32),
        grid=(1,),
        in_specs=[
            pl.BlockSpec((R, H), lambda i: (0, 0)),          # hidden_states (flat)
            pl.BlockSpec((1, H), lambda i: (0, 0)),          # input_ln
            pl.BlockSpec((H, HQKV), lambda i: (0, 0)),       # fused W_qkv
            pl.BlockSpec((RS, D), lambda i: (0, 0)),         # cos (stacked)
            pl.BlockSpec((RS, D), lambda i: (0, 0)),         # sin (stacked, signed)
            pl.BlockSpec((RS, RS), lambda i: (0, 0)),        # additive mask
            pl.BlockSpec((Hq, H), lambda i: (0, 0)),         # W_o
            pl.BlockSpec((1, H), lambda i: (0, 0)),          # post_ln
            pl.BlockSpec((H, 2 * I), lambda i: (0, 0)),      # fused W_gate/up
            pl.BlockSpec((I, H), lambda i: (0, 0)),          # W_down
        ],
        out_specs=pl.BlockSpec((R, H), lambda i: (0, 0)),
        compiler_params=pltpu.CompilerParams(dimension_semantics=("arbitrary",)),
    )(x2d, params["input_ln"], params["wqkv_t"], cos_st, sin_st, mask_add,
      params["wo_t"], params["post_ln"], params["wgu_t"], params["wd_t"])

    return out2d.reshape(B, S, H)


# ----------------------- parameter init / RoPE glue --------------------------
def init_params(key):
    H = CFG["hidden_size"]
    NH, NKV, D = CFG["num_attention_heads"], CFG["num_key_value_heads"], CFG["head_dim"]
    I = CFG["intermediate_size"]
    ks = jax.random.split(key, 7)
    scale = 0.02

    def w(k, out_f, in_f):
        # torch Linear weight is (out, in); store transposed (in, out)
        return (scale * jax.random.normal(k, (out_f, in_f), jnp.float32)).T

    wq_t = w(ks[0], NH * D, H)
    wk_t = w(ks[1], NKV * D, H)
    wv_t = w(ks[2], NKV * D, H)
    wg_t = w(ks[4], I, H)
    wu_t = w(ks[5], I, H)

    return dict(
        input_ln=jnp.ones((1, H), jnp.float32),
        post_ln=jnp.ones((1, H), jnp.float32),
        # fused projection weights (single matmul each for QKV and gate/up)
        wqkv_t=jnp.concatenate([wq_t, wk_t, wv_t], axis=1),   # (H, Hq+2*Hkv)
        wgu_t=jnp.concatenate([wg_t, wu_t], axis=1),          # (H, 2*I) = (32, 128)
        wo_t=w(ks[3], H, NH * D),
        wd_t=w(ks[6], H, I),
    )


def rope_cos_sin(position_ids, head_dim, theta):
    # position_ids: (B, S) int32 -> cos, sin: (B, S, D)
    half = head_dim // 2
    inv_freq = 1.0 / (theta ** (jnp.arange(0, half, dtype=jnp.float32) / half))
    freqs = position_ids.astype(jnp.float32)[..., None] * inv_freq  # (B, S, half)
    emb = jnp.concatenate([freqs, freqs], axis=-1)                  # (B, S, D)
    return jnp.cos(emb), jnp.sin(emb)


# ----------------------------------- main ------------------------------------
if __name__ == "__main__":
    B, S, H = 2, 8, CFG["hidden_size"]
    D = CFG["head_dim"]

    key = jax.random.PRNGKey(0)
    kp, kx = jax.random.split(key)
    params = init_params(kp)

    hidden_states = jax.random.normal(kx, (B, S, H), jnp.float32)
    position_ids = jnp.broadcast_to(jnp.arange(S, dtype=jnp.int32), (B, S))
    cache_position = jnp.arange(S, dtype=jnp.int32)
    attention_mask = jnp.ones((B, S), jnp.float32)
    cos, sin = rope_cos_sin(position_ids, D, CFG["rope_theta"])

    fwd = jax.jit(decoder_layer_forward)
    out = fwd(params, hidden_states, (cos, sin), cache_position,
              attention_mask, position_ids)
    jax.block_until_ready(out)
    assert out.shape == (B, S, H) and jnp.all(jnp.isfinite(out))
    print("KERNEL_OK")
</pallas_src>

<mosaic_0001>
module attributes {stable_mosaic.version = 11 : i64} {
  func.func @layer_kernel(%arg0: i32, %arg1: memref<16x32xf32, #tpu.memory_space<vmem>>, %arg2: memref<1x32xf32, #tpu.memory_space<vmem>>, %arg3: memref<32x64xf32, #tpu.memory_space<vmem>>, %arg4: memref<64x8xf32, #tpu.memory_space<vmem>>, %arg5: memref<64x8xf32, #tpu.memory_space<vmem>>, %arg6: memref<64x64xf32, #tpu.memory_space<vmem>>, %arg7: memref<32x32xf32, #tpu.memory_space<vmem>>, %arg8: memref<1x32xf32, #tpu.memory_space<vmem>>, %arg9: memref<32x128xf32, #tpu.memory_space<vmem>>, %arg10: memref<64x32xf32, #tpu.memory_space<vmem>>, %arg11: memref<16x32xf32, #tpu.memory_space<vmem>>) attributes {dimension_semantics = [#tpu.dimension_semantics<arbitrary>], iteration_bounds = array<i64: 1>, scalar_prefetch = 0 : i64, scratch_operands = 0 : i64, tpu.core_type = #tpu.core_type<tc>, window_params = [{pipeline_mode = #tpu.pipeline_mode<synchronous>, transform_indices = @transform_0, window_bounds = array<i64: 16, 32>}, {pipeline_mode = #tpu.pipeline_mode<synchronous>, transform_indices = @transform_1, window_bounds = array<i64: 1, 32>}, {pipeline_mode = #tpu.pipeline_mode<synchronous>, transform_indices = @transform_2, window_bounds = array<i64: 32, 64>}, {pipeline_mode = #tpu.pipeline_mode<synchronous>, transform_indices = @transform_3, window_bounds = array<i64: 64, 8>}, {pipeline_mode = #tpu.pipeline_mode<synchronous>, transform_indices = @transform_4, window_bounds = array<i64: 64, 8>}, {pipeline_mode = #tpu.pipeline_mode<synchronous>, transform_indices = @transform_5, window_bounds = array<i64: 64, 64>}, {pipeline_mode = #tpu.pipeline_mode<synchronous>, transform_indices = @transform_6, window_bounds = array<i64: 32, 32>}, {pipeline_mode = #tpu.pipeline_mode<synchronous>, transform_indices = @transform_7, window_bounds = array<i64: 1, 32>}, {pipeline_mode = #tpu.pipeline_mode<synchronous>, transform_indices = @transform_8, window_bounds = array<i64: 32, 128>}, {pipeline_mode = #tpu.pipeline_mode<synchronous>, transform_indices = @transform_9, window_bounds = array<i64: 64, 32>}, {pipeline_mode = #tpu.pipeline_mode<synchronous>, transform_indices = @transform_10, window_bounds = array<i64: 16, 32>}]} {
    %c0 = arith.constant 0 : index
    %c0_0 = arith.constant 0 : index
    %0 = vector.load %arg1[%c0, %c0_0] : memref<16x32xf32, #tpu.memory_space<vmem>>, vector<16x32xf32>
    %c0_1 = arith.constant 0 : index
    %c0_2 = arith.constant 0 : index
    %1 = vector.load %arg2[%c0_1, %c0_2] : memref<1x32xf32, #tpu.memory_space<vmem>>, vector<1x32xf32>
    %2 = arith.mulf %0, %0 : vector<16x32xf32>
    %cst = arith.constant dense<0.000000e+00> : vector<16xf32>
    %3 = vector.multi_reduction <add>, %2, %cst [1] : vector<16x32xf32> to vector<16xf32>
    %4 = vector.shape_cast %3 : vector<16xf32> to vector<16x1xf32>
    %cst_3 = arith.constant 3.200000e+01 : f32
    %5 = vector.broadcast %cst_3 : f32 to vector<16x1xf32>
    %6 = arith.divf %4, %5 : vector<16x1xf32>
    %cst_4 = arith.constant 9.99999997E-7 : f32
    %7 = vector.broadcast %cst_4 : f32 to vector<16x1xf32>
    %8 = arith.addf %6, %7 : vector<16x1xf32>
    %9 = math.rsqrt %8 : vector<16x1xf32>
    %10 = vector.broadcast %9 : vector<16x1xf32> to vector<16x32xf32>
    %11 = arith.mulf %0, %10 : vector<16x32xf32>
    %12 = vector.broadcast %1 : vector<1x32xf32> to vector<16x32xf32>
    %13 = arith.mulf %11, %12 : vector<16x32xf32>
    %c0_5 = arith.constant 0 : index
    %c0_6 = arith.constant 0 : index
    %14 = vector.load %arg3[%c0_5, %c0_6] : memref<32x64xf32, #tpu.memory_space<vmem>>, vector<32x64xf32>
    %cst_7 = arith.constant dense<0.000000e+00> : vector<16x64xf32>
    %15 = tpu.matmul %13, %14, %cst_7 {dimension_numbers = #tpu.dot_dimension_numbers<[1], [0], [0], [1], [0, 0, 1, 1], [], []>} : vector<16x32xf32>, vector<32x64xf32>, vector<16x64xf32> -> vector<16x64xf32>
    %c0_8 = arith.constant 0 : index
    %c0_9 = arith.constant 0 : index
    %16 = vector.load %arg4[%c0_8, %c0_9] : memref<64x8xf32, #tpu.memory_space<vmem>>, vector<64x8xf32>
    %c0_10 = arith.constant 0 : index
    %c0_11 = arith.constant 0 : index
    %17 = vector.load %arg5[%c0_10, %c0_11] : memref<64x8xf32, #tpu.memory_space<vmem>>, vector<64x8xf32>
    %18 = vector.extract_strided_slice %16 {offsets = [0, 0], sizes = [16, 8], strides = [1, 1]} : vector<64x8xf32> to vector<16x8xf32>
    %19 = vector.extract_strided_slice %17 {offsets = [0, 0], sizes = [16, 8], strides = [1, 1]} : vector<64x8xf32> to vector<16x8xf32>
    %20 = vector.extract_strided_slice %15 {offsets = [0, 0], sizes = [16, 8], strides = [1, 1]} : vector<16x64xf32> to vector<16x8xf32>
    %21 = vector.extract_strided_slice %15 {offsets = [0, 8], sizes = [16, 8], strides = [1, 1]} : vector<16x64xf32> to vector<16x8xf32>
    %22 = vector.extract_strided_slice %15 {offsets = [0, 16], sizes = [16, 8], strides = [1, 1]} : vector<16x64xf32> to vector<16x8xf32>
    %23 = vector.extract_strided_slice %15 {offsets = [0, 24], sizes = [16, 8], strides = [1, 1]} : vector<16x64xf32> to vector<16x8xf32>
    %24 = tpu.concatenate %20, %21, %22, %23 in 0 : vector<16x8xf32>, vector<16x8xf32>, vector<16x8xf32>, vector<16x8xf32> -> vector<64x8xf32>
    %25 = vector.extract_strided_slice %24 {offsets = [0, 4], sizes = [64, 4], strides = [1, 1]} : vector<64x8xf32> to vector<64x4xf32>
    %26 = vector.extract_strided_slice %24 {offsets = [0, 0], sizes = [64, 4], strides = [1, 1]} : vector<64x8xf32> to vector<64x4xf32>
    %27 = tpu.concatenate %25, %26 in 1 : vector<64x4xf32>, vector<64x4xf32> -> vector<64x8xf32>
    %28 = arith.mulf %24, %16 : vector<64x8xf32>
    %29 = arith.mulf %27, %17 : vector<64x8xf32>
    %30 = arith.addf %28, %29 : vector<64x8xf32>
    %31 = vector.extract_strided_slice %15 {offsets = [0, 32], sizes = [16, 8], strides = [1, 1]} : vector<16x64xf32> to vector<16x8xf32>
    %32 = vector.extract_strided_slice %31 {offsets = [0, 4], sizes = [16, 4], strides = [1, 1]} : vector<16x8xf32> to vector<16x4xf32>
    %33 = vector.extract_strided_slice %31 {offsets = [0, 0], sizes = [16, 4], strides = [1, 1]} : vector<16x8xf32> to vector<16x4xf32>
    %34 = tpu.concatenate %32, %33 in 1 : vector<16x4xf32>, vector<16x4xf32> -> vector<16x8xf32>
    %35 = arith.mulf %31, %18 : vector<16x8xf32>
    %36 = arith.mulf %34, %19 : vector<16x8xf32>
    %37 = arith.addf %35, %36 : vector<16x8xf32>
    %38 = vector.extract_strided_slice %15 {offsets = [0, 40], sizes = [16, 8], strides = [1, 1]} : vector<16x64xf32> to vector<16x8xf32>
    %39 = vector.extract_strided_slice %38 {offsets = [0, 4], sizes = [16, 4], strides = [1, 1]} : vector<16x8xf32> to vector<16x4xf32>
    %40 = vector.extract_strided_slice %38 {offsets = [0, 0], sizes = [16, 4], strides = [1, 1]} : vector<16x8xf32> to vector<16x4xf32>
    %41 = tpu.concatenate %39, %40 in 1 : vector<16x4xf32>, vector<16x4xf32> -> vector<16x8xf32>
    %42 = arith.mulf %38, %18 : vector<16x8xf32>
    %43 = arith.mulf %41, %19 : vector<16x8xf32>
    %44 = arith.addf %42, %43 : vector<16x8xf32>
    %45 = vector.extract_strided_slice %15 {offsets = [0, 48], sizes = [16, 8], strides = [1, 1]} : vector<16x64xf32> to vector<16x8xf32>
    %46 = vector.extract_strided_slice %15 {offsets = [0, 56], sizes = [16, 8], strides = [1, 1]} : vector<16x64xf32> to vector<16x8xf32>
    %47 = tpu.concatenate %37, %37, %44, %44 in 0 : vector<16x8xf32>, vector<16x8xf32>, vector<16x8xf32>, vector<16x8xf32> -> vector<64x8xf32>
    %48 = tpu.concatenate %45, %45, %46, %46 in 0 : vector<16x8xf32>, vector<16x8xf32>, vector<16x8xf32>, vector<16x8xf32> -> vector<64x8xf32>
    %cst_12 = arith.constant dense<0.000000e+00> : vector<64x64xf32>
    %49 = tpu.matmul %30, %47, %cst_12 {dimension_numbers = #tpu.dot_dimension_numbers<[1], [1], [0], [0], [0, 0, 1, 0], [], []>} : vector<64x8xf32>, vector<64x8xf32>, vector<64x64xf32> -> vector<64x64xf32>
    %cst_13 = arith.constant 0.353553385 : f32
    %50 = vector.broadcast %cst_13 : f32 to vector<64x64xf32>
    %51 = arith.mulf %49, %50 : vector<64x64xf32>
    %c0_14 = arith.constant 0 : index
    %c0_15 = arith.constant 0 : index
    %52 = vector.load %arg6[%c0_14, %c0_15] : memref<64x64xf32, #tpu.memory_space<vmem>>, vector<64x64xf32>
    %53 = arith.addf %51, %52 : vector<64x64xf32>
    %cst_16 = arith.constant dense<0xFF800000> : vector<64xf32>
    %54 = vector.multi_reduction <maximumf>, %53, %cst_16 [1] : vector<64x64xf32> to vector<64xf32>
    %55 = vector.shape_cast %54 : vector<64xf32> to vector<64x1xf32>
    %56 = vector.broadcast %55 : vector<64x1xf32> to vector<64x64xf32>
    %57 = arith.subf %53, %56 : vector<64x64xf32>
    %58 = math.exp %57 : vector<64x64xf32>
    %cst_17 = arith.constant dense<0.000000e+00> : vector<64xf32>
    %59 = vector.multi_reduction <add>, %58, %cst_17 [1] : vector<64x64xf32> to vector<64xf32>
    %60 = vector.shape_cast %59 : vector<64xf32> to vector<64x1xf32>
    %61 = tpu.reciprocal %60 {approx = true} : vector<64x1xf32> -> vector<64x1xf32>
    %62 = vector.broadcast %61 : vector<64x1xf32> to vector<64x64xf32>
    %63 = arith.mulf %58, %62 : vector<64x64xf32>
    %cst_18 = arith.constant dense<0.000000e+00> : vector<64x8xf32>
    %64 = tpu.matmul %63, %48, %cst_18 {dimension_numbers = #tpu.dot_dimension_numbers<[1], [0], [0], [1], [0, 0, 1, 1], [], []>} : vector<64x64xf32>, vector<64x8xf32>, vector<64x8xf32> -> vector<64x8xf32>
    %65 = vector.extract_strided_slice %64 {offsets = [0, 0], sizes = [16, 8], strides = [1, 1]} : vector<64x8xf32> to vector<16x8xf32>
    %66 = vector.extract_strided_slice %64 {offsets = [16, 0], sizes = [16, 8], strides = [1, 1]} : vector<64x8xf32> to vector<16x8xf32>
    %67 = vector.extract_strided_slice %64 {offsets = [32, 0], sizes = [16, 8], strides = [1, 1]} : vector<64x8xf32> to vector<16x8xf32>
    %68 = vector.extract_strided_slice %64 {offsets = [48, 0], sizes = [16, 8], strides = [1, 1]} : vector<64x8xf32> to vector<16x8xf32>
    %69 = tpu.concatenate %65, %66, %67, %68 in 1 : vector<16x8xf32>, vector<16x8xf32>, vector<16x8xf32>, vector<16x8xf32> -> vector<16x32xf32>
    %c0_19 = arith.constant 0 : index
    %c0_20 = arith.constant 0 : index
    %70 = vector.load %arg7[%c0_19, %c0_20] : memref<32x32xf32, #tpu.memory_space<vmem>>, vector<32x32xf32>
    %cst_21 = arith.constant dense<0.000000e+00> : vector<16x32xf32>
    %71 = tpu.matmul %69, %70, %cst_21 {dimension_numbers = #tpu.dot_dimension_numbers<[1], [0], [0], [1], [0, 0, 1, 1], [], []>} : vector<16x32xf32>, vector<32x32xf32>, vector<16x32xf32> -> vector<16x32xf32>
    %72 = arith.addf %0, %71 : vector<16x32xf32>
    %c0_22 = arith.constant 0 : index
    %c0_23 = arith.constant 0 : index
    %73 = vector.load %arg8[%c0_22, %c0_23] : memref<1x32xf32, #tpu.memory_space<vmem>>, vector<1x32xf32>
    %74 = arith.mulf %72, %72 : vector<16x32xf32>
    %cst_24 = arith.constant dense<0.000000e+00> : vector<16xf32>
    %75 = vector.multi_reduction <add>, %74, %cst_24 [1] : vector<16x32xf32> to vector<16xf32>
    %76 = vector.shape_cast %75 : vector<16xf32> to vector<16x1xf32>
    %cst_25 = arith.constant 3.200000e+01 : f32
    %77 = vector.broadcast %cst_25 : f32 to vector<16x1xf32>
    %78 = arith.divf %76, %77 : vector<16x1xf32>
    %cst_26 = arith.constant 9.99999997E-7 : f32
    %79 = vector.broadcast %cst_26 : f32 to vector<16x1xf32>
    %80 = arith.addf %78, %79 : vector<16x1xf32>
    %81 = math.rsqrt %80 : vector<16x1xf32>
    %82 = vector.broadcast %81 : vector<16x1xf32> to vector<16x32xf32>
    %83 = arith.mulf %72, %82 : vector<16x32xf32>
    %84 = vector.broadcast %73 : vector<1x32xf32> to vector<16x32xf32>
    %85 = arith.mulf %83, %84 : vector<16x32xf32>
    %c0_27 = arith.constant 0 : index
    %c0_28 = arith.constant 0 : index
    %86 = vector.load %arg9[%c0_27, %c0_28] : memref<32x128xf32, #tpu.memory_space<vmem>>, vector<32x128xf32>
    %cst_29 = arith.constant dense<0.000000e+00> : vector<16x128xf32>
    %87 = tpu.matmul %85, %86, %cst_29 {dimension_numbers = #tpu.dot_dimension_numbers<[1], [0], [0], [1], [0, 0, 1, 1], [], []>} : vector<16x32xf32>, vector<32x128xf32>, vector<16x128xf32> -> vector<16x128xf32>
    %88 = vector.extract_strided_slice %87 {offsets = [0, 0], sizes = [16, 64], strides = [1, 1]} : vector<16x128xf32> to vector<16x64xf32>
    %89 = vector.extract_strided_slice %87 {offsets = [0, 64], sizes = [16, 64], strides = [1, 1]} : vector<16x128xf32> to vector<16x64xf32>
    %90 = arith.negf %88 : vector<16x64xf32>
    %91 = math.exp %90 : vector<16x64xf32>
    %cst_30 = arith.constant 1.000000e+00 : f32
    %92 = vector.broadcast %cst_30 : f32 to vector<16x64xf32>
    %93 = arith.addf %92, %91 : vector<16x64xf32>
    %94 = arith.divf %92, %93 : vector<16x64xf32>
    %95 = arith.mulf %88, %94 : vector<16x64xf32>
    %96 = arith.mulf %95, %89 : vector<16x64xf32>
    %c0_31 = arith.constant 0 : index
    %c0_32 = arith.constant 0 : index
    %97 = vector.load %arg10[%c0_31, %c0_32] : memref<64x32xf32, #tpu.memory_space<vmem>>, vector<64x32xf32>
    %cst_33 = arith.constant dense<0.000000e+00> : vector<16x32xf32>
    %98 = tpu.matmul %96, %97, %cst_33 {dimension_numbers = #tpu.dot_dimension_numbers<[1], [0], [0], [1], [0, 0, 1, 1], [], []>} : vector<16x64xf32>, vector<64x32xf32>, vector<16x32xf32> -> vector<16x32xf32>
    %99 = arith.addf %72, %98 : vector<16x32xf32>
    %c0_34 = arith.constant 0 : index
    %c0_35 = arith.constant 0 : index
    %100 = vector.load %arg11[%c0_34, %c0_35] : memref<16x32xf32, #tpu.memory_space<vmem>>, vector<16x32xf32>
    tpu.vector_store %arg11[%c0_34, %c0_35], %99 {strides = array<i32>} : memref<16x32xf32, #tpu.memory_space<vmem>>, vector<16x32xf32>,
    return
  }
  func.func @transform_0(%arg0: i32) -> (i32, i32) {
    %c0_i32 = arith.constant 0 : i32
    %c0_i32_0 = arith.constant 0 : i32
    %c0_i32_1 = arith.constant 0 : i32
    return %c0_i32, %c0_i32_0 : i32, i32
  }
  func.func @transform_1(%arg0: i32) -> (i32, i32) {
    %c0_i32 = arith.constant 0 : i32
    %c0_i32_0 = arith.constant 0 : i32
    %c0_i32_1 = arith.constant 0 : i32
    return %c0_i32, %c0_i32_0 : i32, i32
  }
  func.func @transform_2(%arg0: i32) -> (i32, i32) {
    %c0_i32 = arith.constant 0 : i32
    %c0_i32_0 = arith.constant 0 : i32
    %c0_i32_1 = arith.constant 0 : i32
    return %c0_i32, %c0_i32_0 : i32, i32
  }
  func.func @transform_3(%arg0: i32) -> (i32, i32) {
    %c0_i32 = arith.constant 0 : i32
    %c0_i32_0 = arith.constant 0 : i32
    %c0_i32_1 = arith.constant 0 : i32
    return %c0_i32, %c0_i32_0 : i32, i32
  }
  func.func @transform_4(%arg0: i32) -> (i32, i32) {
    %c0_i32 = arith.constant 0 : i32
    %c0_i32_0 = arith.constant 0 : i32
    %c0_i32_1 = arith.constant 0 : i32
    return %c0_i32, %c0_i32_0 : i32, i32
  }
  func.func @transform_5(%arg0: i32) -> (i32, i32) {
    %c0_i32 = arith.constant 0 : i32
    %c0_i32_0 = arith.constant 0 : i32
    %c0_i32_1 = arith.constant 0 : i32
    return %c0_i32, %c0_i32_0 : i32, i32
  }
  func.func @transform_6(%arg0: i32) -> (i32, i32) {
    %c0_i32 = arith.constant 0 : i32
    %c0_i32_0 = arith.constant 0 : i32
    %c0_i32_1 = arith.constant 0 : i32
    return %c0_i32, %c0_i32_0 : i32, i32
  }
  func.func @transform_7(%arg0: i32) -> (i32, i32) {
    %c0_i32 = arith.constant 0 : i32
    %c0_i32_0 = arith.constant 0 : i32
    %c0_i32_1 = arith.constant 0 : i32
    return %c0_i32, %c0_i32_0 : i32, i32
  }
  func.func @transform_8(%arg0: i32) -> (i32, i32) {
    %c0_i32 = arith.constant 0 : i32
    %c0_i32_0 = arith.constant 0 : i32
    %c0_i32_1 = arith.constant 0 : i32
    return %c0_i32, %c0_i32_0 : i32, i32
  }
  func.func @transform_9(%arg0: i32) -> (i32, i32) {
    %c0_i32 = arith.constant 0 : i32
    %c0_i32_0 = arith.constant 0 : i32
    %c0_i32_1 = arith.constant 0 : i32
    return %c0_i32, %c0_i32_0 : i32, i32
  }
  func.func @transform_10(%arg0: i32) -> (i32, i32) {
    %c0_i32 = arith.constant 0 : i32
    %c0_i32_0 = arith.constant 0 : i32
    %c0_i32_1 = arith.constant 0 : i32
    return %c0_i32, %c0_i32_0 : i32, i32
  }
}

</mosaic_0001>

<bundles_post_ra>
// kernel: neg.1
= control target key start
LH: loop header
LB: loop body
LE: loop exit
PB: predicated region body
PF: predicated region fallthrough
CT: control target
= control target key end

     0   :  { %s24_s0 = inlined_call_operand.vmem [shape: f32[16,4], index: 0, kind: input, shape index: {}]   ;;  %s25_s1 = inlined_call_operand.vmem [shape: f32[16,4], index: 1, kind: output, shape index: {}]  }
   0x1   :  { %v2_v0 = vld [vmem:[%s24_s0] sm:$0xf] }
   0x2   :  { %v5_v1 = vxor.u32 2147483648, %v2_v0 }
   0x4   :  { %7 = vst [vmem:[%s25_s1] sm:$0xf] %v5_v1 }

// kernel: decoder_layer_forward.1
= control target key start
LH: loop header
LB: loop body
LE: loop exit
PB: predicated region body
PF: predicated region fallthrough
CT: control target
= control target key end

     0   :  { %vm41_vm0 = vcmask 261120   ;;  %s1957_s0 = inlined_call_operand.vmem [shape: f32[16,32], index: 0, kind: input, shape index: {}]   ;;  %s1958_s1 = inlined_call_operand.vmem [shape: f32[1,32], index: 1, kind: input, shape index: {}]   ;;  %s1959_s2 = inlined_call_operand.vmem [shape: f32[32,64], index: 2, kind: input, shape index: {}]   ;;  %s1960_s3 = inlined_call_operand.vmem [shape: f32[64,8], index: 3, kind: input, shape index: {}]   ;;  %s1961_s4 = inlined_call_operand.vmem [shape: f32[64,8], index: 4, kind: input, shape index: {}]   ;;  %s1962_s5 = inlined_call_operand.vmem [shape: f32[64,64], index: 5, kind: input, shape index: {}]   ;;  %s1963_s6 = inlined_call_operand.vmem [shape: f32[32,32], index: 6, kind: input, shape index: {}]   ;;  %s1964_s7 = inlined_call_operand.vmem [shape: f32[1,32], index: 7, kind: input, shape index: {}]   ;;  %s1965_s8 = inlined_call_operand.vmem [shape: f32[32,128], index: 8, kind: input, shape index: {}]   ;;  %s1966_s9 = inlined_call_operand.vmem [shape: f32[64,32], index: 9, kind: input, shape index: {}]   ;;  %s1967_s10 = inlined_call_operand.hbm [shape: f32[16,32], index: 10, kind: output, shape index: {}]  }
   0x1   :  { %v1576_v0 = vld [vmem:[%s1957_s0] sm:$0xff]  ;;  %v1581_v1 = vld [vmem:[%s1957_s0 + $0x8] sm:$0xff] }
   0x2   :  { %15 = vsyncpa [#allocation3], 0  ;;  %v39_v2 = vmul.f32 %v1576_v0, %v1576_v0  ;;  %v40_v3 = vmul.f32 %v1581_v1, %v1581_v1  ;;  %v65_v6 = vld [vmem:[%s1959_s2] sm:$0xff]  ;;  %v66_v7 = vld [vmem:[%s1959_s2 + $0x8] sm:$0xff]  ;;  %s1501_s26 = smov 84   ;;  %s1503_s29 = smov 40  }
   0x3   :  { %v67_v8 = vld [vmem:[%s1959_s2 + $0x10] sm:$0xff]  ;;  %v1305_v9 = vpack.c.bf16 %v66_v7, %v65_v6  ;;  %v68_v10 = vld [vmem:[%s1959_s2 + $0x18] sm:$0xff]  ;;  %v1101_v19 = vld [vmem:[%s1958_s1] ss:$0 sm:$0xff]  ;;  %s1500_s2 = smov 92   ;;  %s1502_s1 = smov 100  }
   0x4   :  { %v42_v4 = vsel %vm41_vm0, %v39_v2, 0.0  ;;  %v45_v5 = vsel %vm41_vm0, %v40_v3, 0.0  ;;  %v1309_v11 = vpack.c.bf16 %v68_v10, %v67_v8  ;;  %v1623_v28 = vld [vmem:[%s1960_s3] sm:$0xff]  ;;  %v1629_v29 = vld [vmem:[%s1960_s3 + $0x8] sm:$0xff]  ;;  %vm234_vm1 = vcmask 31744   ;;  %s1504_s16 = smov 32  }
   0x5   :  { %43 = vadd.xlane.f32.xlu0 %v42_v4  ;;  %1306 = vmatprep.subr.bf16.mxu0 %v1305_v9  ;;  %v1635_v31 = vld [vmem:[%s1961_s4] sm:$0xff]  ;;  %v1642_v36 = vld [vmem:[%s1961_s4 + $0x8] sm:$0xff]  ;;  %s1505_s17 = smov 120   ;;  %s1506_s18 = smov 112   ;;  %vm347_vm2 = vcmask 64512   ;;  %vm509_vm4 = vcmask 523264  }
   0x6   :  { %1308 = vmatpush3.bf16.msra.mxu0 %v1305_v9  ;;  %s1507_s19 = smov 104   ;;  %s1508_s0 = smov 96   ;;  %vm1688_vm3 = vmpackc.low %vm347_vm2, %vm347_vm2  ;;  %vm768_vm5 = vcmask 195584   ;;  %vm765_vm6 = vcmask 130048  }
   0x7   :  { %1310 = vmatprep.subr.bf16.mxu0 %v1309_v11  ;;  %s1509_s20 = smov 124   ;;  %s1510_s21 = smov 4  }
   0x8   :  { %s1512_s22 = smov 8   ;;  %s1514_s23 = smov 24  }
   0x9   :  { %46 = vadd.xlane.f32.xlu0 %v45_v5 }
   0xa   :  { %1312 = vmatpush3.bf16.msra.mxu0 %v1309_v11 }
  0x92   :  { %v44_v12 = vpop.xlane.xlu0 %43 }
  0x93   :  { %v49_v13 = vmul.f32 0.03125, %v44_v12 }
  0x95   :  { %v51_v14 = vadd.f32 1e-06, %v49_v13 }
  0x96   :  { %v47_v15 = vpop.xlane.xlu0 %46 }
  0x97   :  { %1428 = vrsqrt.f32 %v51_v14  ;;  %v50_v16 = vmul.f32 0.03125, %v47_v15 }
  0x99   :  { %v52_v17 = vadd.f32 1e-06, %v50_v16 }
  0x9b   :  { %1430 = vrsqrt.f32 %v52_v17 }
  0xa1   :  { %v1429_v18 = vpop.eup %1428 }
  0xa2   :  { %v55_v20 = vmul.f32 %v1429_v18, %v1576_v0 }
  0xa4   :  { %v63_v21 = vmul.f32 %v1101_v19, %v55_v20 }
  0xa5   :  { %v1431_v22 = vpop.eup %1430 }
  0xa6   :  { %v56_v23 = vmul.f32 %v1431_v22, %v1581_v1  ;;  %1205 = vmatprep.mubr.msk.f32.mxu0 %vm41_vm0, %v63_v21 }
  0xa8   :  { %v64_v24 = vmul.f32 %v1101_v19, %v56_v23 }
  0xaa   :  { %1206 = vmatmul.mubr.msk.f32.vlgmr.msra.gmra.mrb[0].mxu0 %vm41_vm0, %v64_v24 }
 0x17d   :  { %v1608_v25 = vpop.f32.mrb[0].mxu0 }
 0x17e   :  { %269 = vrot.lane.b32.xlu1 %v1608_v25, %s1500_s2  ;;  %v1611_v26 = vpop.f32.mrb[1].mxu0 }
 0x17f   :  { %303 = vrot.lane.b32.xlu0 %v1611_v26, %s1501_s26  ;;  %v1418_v27 = vpack.i.bf16 %v1608_v25, %v1611_v26  ;;  %v243_v18 = vmul.f32 %v1623_v28, %v1611_v26 }
 0x182   :  { %267 = vrot.lane.b32.xlu1 %v1611_v26, %s1500_s2 }
 0x186   :  { %305 = vrot.lane.b32.xlu1 %v1608_v25, %s1501_s26 }
 0x18a   :  { %273 = vrot.lane.b32.xlu1 %v1611_v26, %s1502_s1 }
 0x18e   :  { %275 = vrot.lane.b32.xlu1 %v1608_v25, %s1502_s1 }
 0x192   :  { %311 = vrot.lane.b32.xlu1 %v1623_v28, %s1503_s29 }
 0x196   :  { %313 = vrot.lane.b32.xlu1 %v1629_v29, %s1503_s29 }
 0x1f0   :  { %v270_v30 = vpop.permute.xlu1 %269 }
 0x1f1   :  { %v304_v32 = vpop.permute.xlu0 %303 }
 0x1f4   :  { %v268_v33 = vpop.permute.xlu1 %267 }
 0x1f5   :  { %v309_v34 = vsel %vm234_vm1, %v304_v32, %v268_v33 }
 0x1f6   :  { %v319_v35 = vmul.f32 %v309_v34, %v1635_v31 }
 0x1f8   :  { %323 = vrot.lane.b32.xlu1 %v319_v35, %s1503_s29  ;;  %v306_v37 = vpop.permute.xlu1 %305  ;;  %v160_v35 = vld [vmem:[%s1961_s4 + $0x10] sm:$0xff] }
 0x1f9   :  { %v310_v38 = vsel %vm234_vm1, %v306_v37, %v270_v30 }
 0x1fa   :  { %v320_v39 = vmul.f32 %v310_v38, %v1642_v36 }
 0x1fc   :  { %283 = vrot.lane.b32.xlu1 %v1623_v28, %s1504_s16  ;;  %325 = vrot.lane.b32.xlu0 %v320_v39, %s1503_s29  ;;  %v274_v40 = vpop.permute.xlu1 %273  ;;  %v152_v39 = vld [vmem:[%s1960_s3 + $0x10] sm:$0xff] }
 0x1fd   :  { %v279_v41 = vsel %vm234_vm1, %v268_v33, %v274_v40 }
 0x1fe   :  { %v291_v42 = vmul.f32 %v279_v41, %v1635_v31 }
 0x200   :  { %285 = vrot.lane.b32.xlu0 %v1629_v29, %s1504_s16  ;;  %295 = vrot.lane.b32.xlu1 %v291_v42, %s1504_s16  ;;  %v276_v43 = vpop.permute.xlu1 %275  ;;  %v161_v42 = vld [vmem:[%s1961_s4 + $0x18] sm:$0xff] }
 0x201   :  { %v280_v44 = vsel %vm234_vm1, %v270_v30, %v276_v43 }
 0x202   :  { %v292_v45 = vmul.f32 %v280_v44, %v1642_v36  ;;  %v244_v44 = vmul.f32 %v1608_v25, %v1629_v29 }
 0x204   :  { %297 = vrot.lane.b32.xlu0 %v292_v45, %s1504_s16  ;;  %v312_v46 = vpop.permute.xlu1 %311 }
 0x205   :  { %v317_v49 = vmul.f32 %v312_v46, %v1611_v26  ;;  %v162_v46 = vld [vmem:[%s1961_s4 + $0x20] sm:$0xff] }
 0x208   :  { %168 = vrot.lane.b32.xlu0 %v1611_v26, %s1505_s17  ;;  %v314_v47 = vpop.permute.xlu1 %313 }
 0x209   :  { %v318_v50 = vmul.f32 %v1608_v25, %v314_v47 }
 0x20c   :  { %174 = vrot.lane.b32.xlu0 %v1611_v26, %s1506_s18 }
 0x210   :  { %180 = vrot.lane.b32.xlu0 %v1611_v26, %s1507_s19 }
 0x26a   :  { %v324_v48 = vpop.permute.xlu1 %323 }
 0x26b   :  { %v329_v53 = vadd.f32 %v324_v48, %v317_v49 }
 0x26e   :  { %v326_v51 = vpop.permute.xlu0 %325  ;;  %v284_v52 = vpop.permute.xlu1 %283 }
 0x26f   :  { %v330_v54 = vadd.f32 %v326_v51, %v318_v50  ;;  %v289_v58 = vmul.f32 %v284_v52, %v1611_v26  ;;  %v154_v50 = vld [vmem:[%s1960_s3 + $0x20] sm:$0xff] }
 0x271   :  { %v1403_v55 = vpack.i.bf16 %v330_v54, %v329_v53  ;;  %v163_v54 = vld [vmem:[%s1961_s4 + $0x28] sm:$0xff] }
 0x272   :  { %v286_v56 = vpop.permute.xlu0 %285  ;;  %v296_v57 = vpop.permute.xlu1 %295 }
 0x273   :  { %1404 = vrot.lane.b32.xlu1 %v1403_v55, %s1505_s17  ;;  %v290_v59 = vmul.f32 %v1608_v25, %v286_v56  ;;  %v301_v61 = vadd.f32 %v296_v57, %v289_v58  ;;  %v155_v58 = vld [vmem:[%s1960_s3 + $0x28] sm:$0xff] }
 0x276   :  { %v298_v60 = vpop.permute.xlu0 %297 }
 0x277   :  { %v302_v62 = vadd.f32 %v298_v60, %v290_v59  ;;  %170 = vrot.lane.b32.xlu1 %v1608_v25, %s1505_s17 }
 0x279   :  { %v1408_v63 = vpack.i.bf16 %v302_v62, %v301_v61 }
 0x27a   :  { %v1668_v2 = vpop.permute.xlu0 %168 }
 0x27b   :  { %176 = vrot.lane.b32.xlu1 %v1608_v25, %s1506_s18  ;;  %1409 = vrot.lane.b32.xlu0 %v1408_v63, %s1508_s0  ;;  %v245_v48 = vmul.f32 %v1668_v2, %v152_v39  ;;  %v156_v63 = vld [vmem:[%s1960_s3 + $0x30] sm:$0xff] }
 0x27e   :  { %v1672_v3 = vpop.permute.xlu0 %174 }
 0x27f   :  { %182 = vrot.lane.b32.xlu1 %v1608_v25, %s1507_s19  ;;  %186 = vrot.lane.b32.xlu0 %v1611_v26, %s1509_s20  ;;  %v247_v57 = vmul.f32 %v1672_v3, %v154_v50 }
 0x282   :  { %v1674_v5 = vpop.permute.xlu0 %180 }
 0x283   :  { %210 = vrot.lane.b32.xlu1 %v1611_v26, %s1510_s21  ;;  %188 = vrot.lane.b32.xlu0 %v1608_v25, %s1509_s20  ;;  %v249_v11 = vmul.f32 %v1674_v5, %v156_v63 }
 0x287   :  { %190 = vrot.lane.b32.xlu0 %v1668_v2, %s1509_s20 }
 0x2e5   :  { %v1405_v4 = vpop.permute.xlu1 %1404 }
 0x2e6   :  { %1414 = vrot.lane.b32.xlu1 %v1405_v4, %s1508_s0 }
 0x2e9   :  { %v1676_v6 = vpop.permute.xlu1 %170 }
 0x2ea   :  { %192 = vrot.lane.b32.xlu0 %v1676_v6, %s1509_s20  ;;  %212 = vrot.lane.b32.xlu1 %v1608_v25, %s1510_s21 }
 0x2ed   :  { %v1410_v7 = vpop.permute.xlu0 %1409  ;;  %v1680_v8 = vpop.permute.xlu1 %176 }
 0x2ee   :  { %v1412_v9 = vunpack.i.h.bf16 %v1410_v7  ;;  %v1411_v10 = vunpack.i.l.bf16 %v1410_v7  ;;  %194 = vrot.lane.b32.xlu0 %v1672_v3, %s1509_s20  ;;  %214 = vrot.lane.b32.xlu1 %v1668_v2, %s1510_s21  ;;  %v248_v7 = vmul.f32 %v1680_v8, %v155_v58 }
 0x2f0   :  { %v1313_v12 = vpack.c.bf16 %v1412_v9, %v1411_v10 }
 0x2f1   :  { %v1692_v13 = vpop.permute.xlu1 %182  ;;  %v187_v14 = vpop.permute.xlu0 %186 }
 0x2f2   :  { %1315 = vmatprep.subr.msk.bf16.mxu1 %vm1688_vm3, %v1313_v12  ;;  %196 = vrot.lane.b32.xlu0 %v1680_v8, %s1509_s20 }
 0x2f3   :  { %1318 = vmatpush3.bf16.xpose.msk.msra.mxu1 %vm1688_vm3, %v1313_v12  ;;  %216 = vrot.lane.b32.xlu1 %v1676_v6, %s1510_s21 }
 0x2f4   :  { %1321 = vmatprep.subr.msk.bf16.mxu1 %vm1688_vm3, %v1313_v12 }
 0x2f5   :  { %v211_v15 = vpop.permute.xlu1 %210  ;;  %v189_v20 = vpop.permute.xlu0 %188 }
 0x2f6   :  { %v235_v16 = vsel %vm234_vm1, %v187_v14, %v211_v15  ;;  %198 = vrot.lane.b32.xlu0 %v1674_v5, %s1509_s20  ;;  %v157_v15 = vld [vmem:[%s1960_s3 + $0x38] sm:$0xff] }
 0x2f7   :  { %v251_v17 = vmul.f32 %v235_v16, %v1635_v31  ;;  %218 = vrot.lane.b32.xlu1 %v1672_v3, %s1510_s21  ;;  %v164_v3 = vld [vmem:[%s1961_s4 + $0x30] sm:$0xff]  ;;  %v165_v16 = vld [vmem:[%s1961_s4 + $0x38] sm:$0xff] }
 0x2f9   :  { %v259_v19 = vadd.f32 %v251_v17, %v243_v18  ;;  %v191_v22 = vpop.permute.xlu0 %190 }
 0x2fa   :  { %200 = vrot.lane.b32.xlu0 %v1692_v13, %s1509_s20 }
 0x2fb   :  { %1324 = vmatpush3.bf16.xpose.msk.msra.mxu1 %vm1688_vm3, %v1313_v12  ;;  %1224 = vmatprep.mubr.msk.f32.mxu1 %vm347_vm2, %v259_v19 }
 0x2fc   :  { %220 = vrot.lane.b32.xlu1 %v1680_v8, %s1510_s21 }
 0x300   :  { %222 = vrot.lane.b32.xlu1 %v1674_v5, %s1510_s21 }
 0x304   :  { %224 = vrot.lane.b32.xlu1 %v1692_v13, %s1510_s21 }
 0x358   :  { %v1415_v21 = vpop.permute.xlu1 %1414 }
 0x359   :  { %v1417_v23 = vunpack.i.h.bf16 %v1415_v21  ;;  %v1416_v24 = vunpack.i.l.bf16 %v1415_v21 }
 0x35b   :  { %v1325_v28 = vpack.c.bf16 %v1417_v23, %v1416_v24  ;;  %v494_v23 = vld [vmem:[%s1962_s5 + $0x8] sm:$0xff] }
 0x35c   :  { %v213_v30 = vpop.permute.xlu1 %212  ;;  %v193_v31 = vpop.permute.xlu0 %192 }
 0x35d   :  { %1327 = vmatprep.subr.msk.bf16.mxu1 %vm1688_vm3, %v1325_v28  ;;  %v236_v34 = vsel %vm234_vm1, %v189_v20, %v213_v30  ;;  %v250_v20 = vmul.f32 %v1692_v13, %v157_v15  ;;  %v493_v30 = vld [vmem:[%s1962_s5] sm:$0xff] }
 0x35e   :  { %1330 = vmatpush3.bf16.xpose.msk.msra.mxu1 %vm1688_vm3, %v1325_v28  ;;  %v252_v40 = vmul.f32 %v236_v34, %v1642_v36  ;;  %v153_v36 = vld [vmem:[%s1960_s3 + $0x18] sm:$0xff]  ;;  %s1513_s3 = smov 16  }
 0x35f   :  { %1333 = vmatprep.subr.msk.bf16.mxu1 %vm1688_vm3, %v1325_v28  ;;  %v246_v55 = vmul.f32 %v1676_v6, %v153_v36 }
 0x360   :  { %v215_v32 = vpop.permute.xlu1 %214  ;;  %v195_v33 = vpop.permute.xlu0 %194  ;;  %v260_v51 = vadd.f32 %v252_v40, %v244_v44 }
 0x361   :  { %v237_v37 = vsel %vm234_vm1, %v191_v22, %v215_v32 }
 0x362   :  { %v253_v41 = vmul.f32 %v237_v37, %v160_v35  ;;  %v495_v37 = vld [vmem:[%s1962_s5 + $0x10] sm:$0xff] }
 0x364   :  { %v197_v45 = vpop.permute.xlu0 %196  ;;  %v261_v52 = vadd.f32 %v253_v41, %v245_v48  ;;  %v496_v41 = vld [vmem:[%s1962_s5 + $0x18] sm:$0xff] }
 0x365   :  { %v217_v38 = vpop.permute.xlu1 %216 }
 0x366   :  { %1336 = vmatpush3.bf16.xpose.msk.msra.mxu1 %vm1688_vm3, %v1325_v28  ;;  %v238_v43 = vsel %vm234_vm1, %v193_v31, %v217_v38 }
 0x367   :  { %v254_v29 = vmul.f32 %v238_v43, %v161_v42 }
 0x368   :  { %v199_v60 = vpop.permute.xlu0 %198 }
 0x369   :  { %v219_v47 = vpop.permute.xlu1 %218  ;;  %v262_v61 = vadd.f32 %v254_v29, %v246_v55 }
 0x36a   :  { %v239_v49 = vsel %vm234_vm1, %v195_v33, %v219_v47 }
 0x36b   :  { %v255_v53 = vmul.f32 %v239_v49, %v162_v46  ;;  %v498_v49 = vld [vmem:[%s1962_s5 + $0x28] sm:$0xff] }
 0x36c   :  { %v201_v8 = vpop.permute.xlu0 %200 }
 0x36d   :  { %1225 = vmatmul.mubr.msk.f32.vlgmr.msra.gmra.mrb[0].mxu1 %vm347_vm2, %v260_v51  ;;  %v263_v4 = vadd.f32 %v255_v53, %v247_v57  ;;  %v500_v57 = vld [vmem:[%s1962_s5 + $0x38] sm:$0xff] }
 0x36e   :  { %v221_v56 = vpop.permute.xlu1 %220  ;;  %1227 = vmatprep.mubr.msk.f32.mxu1 %vm347_vm2, %v261_v52 }
 0x36f   :  { %v240_v59 = vsel %vm234_vm1, %v197_v45, %v221_v56  ;;  %v497_v45 = vld [vmem:[%s1962_s5 + $0x20] sm:$0xff]  ;;  %v499_v56 = vld [vmem:[%s1962_s5 + $0x30] sm:$0xff]  ;;  %s1511_s5 = smov 80  }
 0x370   :  { %v256_v62 = vmul.f32 %v240_v59, %v163_v54 }
 0x371   :  { %1228 = vmatmul.mubr.msk.f32.gmra.mrb[2].mxu1 %vm347_vm2, %v262_v61 }
 0x372   :  { %v223_v9 = vpop.permute.xlu1 %222  ;;  %1230 = vmatprep.mubr.msk.f32.mxu1 %vm347_vm2, %v263_v4  ;;  %v264_v12 = vadd.f32 %v256_v62, %v248_v7 }
 0x373   :  { %v241_v10 = vsel %vm234_vm1, %v199_v60, %v223_v9 }
 0x374   :  { %v257_v14 = vmul.f32 %v241_v10, %v164_v3 }
 0x375   :  { %1231 = vmatmul.mubr.msk.f32.gmra.mrb[4].mxu1 %vm347_vm2, %v264_v12 }
 0x376   :  { %v265_v17 = vadd.f32 %v257_v14, %v249_v11  ;;  %v225_v18 = vpop.permute.xlu1 %224 }
 0x377   :  { %v242_v19 = vsel %vm234_vm1, %v201_v8, %v225_v18 }
 0x378   :  { %v258_v5 = vmul.f32 %v242_v19, %v165_v16  ;;  %1233 = vmatprep.mubr.msk.f32.mxu1 %vm347_vm2, %v265_v17 }
 0x37a   :  { %v266_v21 = vadd.f32 %v258_v5, %v250_v20 }
 0x37c   :  { %1234 = vmatmul.mubr.msk.f32.gmra.mrb[6].mxu1 %vm347_vm2, %v266_v21 }
 0x440   :  { %v1226_v22 = vpop.f32.mrb[0].mxu1 }
 0x441   :  { %v486_v24 = vmul.f32 0.35355338, %v1226_v22  ;;  %v446_v28 = vpop.f32.mrb[1].mxu1 }
 0x442   :  { %v485_v31 = vmul.f32 0.35355338, %v446_v28 }
 0x443   :  { %v502_v13 = vadd.f32 %v494_v23, %v486_v24 }
 0x444   :  { %v1229_v32 = vpop.f32.mrb[2].mxu1  ;;  %v501_v33 = vadd.f32 %v493_v30, %v485_v31 }
 0x445   :  { %v456_v34 = vpop.f32.mrb[3].mxu1  ;;  %v513_v35 = vsel %vm509_vm4, %v502_v13, -inf  ;;  %v488_v38 = vmul.f32 0.35355338, %v1229_v32 }
 0x446   :  { %v487_v39 = vmul.f32 0.35355338, %v456_v34  ;;  %514 = vmax.xlane.f32.xlu1 %v513_v35  ;;  %v510_v40 = vsel %vm509_vm4, %v501_v33, -inf }
 0x447   :  { %511 = vmax.xlane.f32.xlu0 %v510_v40  ;;  %v504_v36 = vadd.f32 %v496_v41, %v488_v38 }
 0x448   :  { %v1232_v42 = vpop.f32.mrb[4].mxu1  ;;  %v503_v43 = vadd.f32 %v495_v37, %v487_v39 }
 0x449   :  { %v466_v44 = vpop.f32.mrb[5].mxu1  ;;  %v490_v46 = vmul.f32 0.35355338, %v1232_v42  ;;  %v519_v29 = vsel %vm509_vm4, %v504_v36, -inf }
 0x44a   :  { %v489_v47 = vmul.f32 0.35355338, %v466_v44  ;;  %v516_v48 = vsel %vm509_vm4, %v503_v43, -inf }
 0x44b   :  { %517 = vmax.xlane.f32.xlu0 %v516_v48  ;;  %v506_v53 = vadd.f32 %v498_v49, %v490_v46 }
 0x44c   :  { %v505_v50 = vadd.f32 %v497_v45, %v489_v47 }
 0x44d   :  { %v525_v59 = vsel %vm509_vm4, %v506_v53, -inf }
 0x44e   :  { %v522_v52 = vsel %vm509_vm4, %v505_v50, -inf }
 0x44f   :  { %v1235_v51 = vpop.f32.mrb[6].mxu1  ;;  %520 = vmax.xlane.f32.xlu0 %v519_v29  ;;  %523 = vmax.xlane.f32.xlu1 %v522_v52 }
 0x450   :  { %v492_v54 = vmul.f32 0.35355338, %v1235_v51  ;;  %v476_v55 = vpop.f32.mrb[7].mxu1 }
 0x451   :  { %v491_v58 = vmul.f32 0.35355338, %v476_v55 }
 0x452   :  { %v508_v61 = vadd.f32 %v500_v57, %v492_v54 }
 0x453   :  { %v507_v60 = vadd.f32 %v499_v56, %v491_v58  ;;  %526 = vmax.xlane.f32.xlu0 %v525_v59 }
 0x454   :  { %v531_v63 = vsel %vm509_vm4, %v508_v61, -inf }
 0x455   :  { %v528_v62 = vsel %vm509_vm4, %v507_v60, -inf }
 0x456   :  { %529 = vmax.xlane.f32.xlu1 %v528_v62 }
 0x457   :  { %532 = vmax.xlane.f32.xlu0 %v531_v63 }
 0x4d3   :  { %v515_v4 = vpop.xlane.xlu1 %514 }
 0x4d4   :  { %v535_v3 = vsub.f32 %v502_v13, %v515_v4  ;;  %v512_v7 = vpop.xlane.xlu0 %511 }
 0x4d5   :  { %v534_v9 = vsub.f32 %v501_v33, %v512_v7 }
 0x4d6   :  { %v544_v10 = vmul.f32 1.442695, %v535_v3 }
 0x4d7   :  { %v542_v11 = vmul.f32 1.442695, %v534_v9 }
 0x4d8   :  { %1432 = vpow2.f32 %v544_v10  ;;  %v518_v12 = vpop.xlane.xlu0 %517 }
 0x4d9   :  { %1434 = vpow2.f32 %v542_v11  ;;  %v536_v14 = vsub.f32 %v503_v43, %v518_v12 }
 0x4db   :  { %v546_v15 = vmul.f32 1.442695, %v536_v14 }
 0x4dc   :  { %v521_v16 = vpop.xlane.xlu0 %520  ;;  %v524_v8 = vpop.xlane.xlu1 %523 }
 0x4dd   :  { %1436 = vpow2.f32 %v546_v15  ;;  %v537_v17 = vsub.f32 %v504_v36, %v521_v16  ;;  %v538_v18 = vsub.f32 %v505_v50, %v524_v8  ;;  %v1423_v36 = vpack.i.bf16 %v1676_v6, %v1668_v2 }
 0x4df   :  { %v548_v19 = vmul.f32 1.442695, %v537_v17  ;;  %v550_v20 = vmul.f32 1.442695, %v538_v18  ;;  %v771_v17 = vld [vmem:[%s1963_s6] sm:$0xff]  ;;  %v772_v18 = vld [vmem:[%s1963_s6 + $0x8] sm:$0xff] }
 0x4e0   :  { %v527_v5 = vpop.xlane.xlu0 %526 }
 0x4e1   :  { %1438 = vpow2.f32 %v548_v19  ;;  %v539_v21 = vsub.f32 %v506_v53, %v527_v5  ;;  %v1353_v19 = vpack.c.bf16 %v772_v18, %v771_v17  ;;  %v773_v5 = vld [vmem:[%s1963_s6 + $0x10] sm:$0xff] }
 0x4e2   :  { %v1824_v22 = vpop.eup %1432  ;;  %1440 = vpow2.f32 %v550_v20 }
 0x4e3   :  { %v530_v23 = vpop.xlane.xlu1 %529  ;;  %v1435_v24 = vpop.eup %1434  ;;  %v552_v28 = vmul.f32 1.442695, %v539_v21  ;;  %v561_v31 = vsel %vm509_vm4, %v1824_v22, 0.0  ;;  %v774_v21 = vld [vmem:[%s1963_s6 + $0x18] sm:$0xff] }
 0x4e4   :  { %v540_v30 = vsub.f32 %v507_v60, %v530_v23  ;;  %562 = vadd.xlane.f32.xlu0 %v561_v31  ;;  %v533_v13 = vpop.xlane.xlu0 %532  ;;  %v558_v32 = vsel %vm509_vm4, %v1435_v24, 0.0  ;;  %v1357_v23 = vpack.c.bf16 %v774_v21, %v773_v5 }
 0x4e5   :  { %1442 = vpow2.f32 %v552_v28  ;;  %v541_v33 = vsub.f32 %v508_v61, %v533_v13  ;;  %559 = vadd.xlane.f32.xlu1 %v558_v32 }
 0x4e6   :  { %v554_v35 = vmul.f32 1.442695, %v540_v30 }
 0x4e7   :  { %v1829_v34 = vpop.eup %1436  ;;  %v556_v37 = vmul.f32 1.442695, %v541_v33 }
 0x4e8   :  { %v564_v38 = vsel %vm509_vm4, %v1829_v34, 0.0 }
 0x4e9   :  { %1444 = vpow2.f32 %v556_v37  ;;  %565 = vadd.xlane.f32.xlu1 %v564_v38 }
 0x4ea   :  { %1446 = vpow2.f32 %v554_v35 }
 0x4eb   :  { %v1833_v39 = vpop.eup %1438 }
 0x4ec   :  { %v1835_v40 = vpop.eup %1440  ;;  %v567_v41 = vsel %vm509_vm4, %v1833_v39, 0.0 }
 0x4ed   :  { %568 = vadd.xlane.f32.xlu0 %v567_v41  ;;  %v570_v42 = vsel %vm509_vm4, %v1835_v40, 0.0 }
 0x4ee   :  { %571 = vadd.xlane.f32.xlu1 %v570_v42 }
 0x4ef   :  { %v1443_v43 = vpop.eup %1442 }
 0x4f0   :  { %v573_v44 = vsel %vm509_vm4, %v1443_v43, 0.0 }
 0x4f1   :  { %574 = vadd.xlane.f32.xlu0 %v573_v44 }
 0x4f3   :  { %v1842_v45 = vpop.eup %1444 }
 0x4f4   :  { %v579_v46 = vsel %vm509_vm4, %v1842_v45, 0.0  ;;  %v1447_v47 = vpop.eup %1446 }
 0x4f5   :  { %580 = vadd.xlane.f32.xlu0 %v579_v46  ;;  %v576_v48 = vsel %vm509_vm4, %v1447_v47, 0.0 }
 0x4f9   :  { %577 = vadd.xlane.f32.xlu0 %v576_v48 }
 0x4ff   :  { %1419 = vrot.lane.b32.xlu1 %v1418_v27, %s1511_s5 }
 0x50f   :  { %1424 = vrot.lane.b32.xlu0 %v1423_v36, %s1511_s5 }
 0x571   :  { %v563_v50 = vpop.xlane.xlu0 %562 }
 0x572   :  { %v560_v49 = vpop.xlane.xlu1 %559 }
 0x573   :  { %1448 = vrcp.f32 %v560_v49 }
 0x574   :  { %1450 = vrcp.f32 %v563_v50 }
 0x576   :  { %v566_v51 = vpop.xlane.xlu1 %565 }
 0x577   :  { %1452 = vrcp.f32 %v566_v51 }
 0x57a   :  { %v569_v29 = vpop.xlane.xlu0 %568 }
 0x57b   :  { %v572_v52 = vpop.xlane.xlu1 %571  ;;  %1454 = vrcp.f32 %v569_v29 }
 0x57c   :  { %1456 = vrcp.f32 %v572_v52  ;;  %v885_v52 = vld [vmem:[%s1965_s8 + $0x10] sm:$0xff] }
 0x57d   :  { %v1449_v53 = vpop.eup %1448 }
 0x57e   :  { %v575_v54 = vpop.xlane.xlu0 %574  ;;  %v590_v55 = vmul.f32 %v1449_v53, %v1435_v24  ;;  %v1451_v61 = vpop.eup %1450 }
 0x57f   :  { %v1420_v56 = vpop.permute.xlu1 %1419  ;;  %1458 = vrcp.f32 %v575_v54  ;;  %v591_v63 = vmul.f32 %v1451_v61, %v1824_v22  ;;  %v886_v54 = vld [vmem:[%s1965_s8 + $0x18] sm:$0xff] }
 0x580   :  { %v1422_v57 = vunpack.i.h.bf16 %v1420_v56  ;;  %v1421_v58 = vunpack.i.l.bf16 %v1420_v56  ;;  %1252 = vmatprep.mubr.msk.f32.mxu0 %vm509_vm4, %v590_v55  ;;  %v1365_v55 = vpack.c.bf16 %v886_v54, %v885_v52 }
 0x581   :  { %v1453_v62 = vpop.eup %1452 }
 0x582   :  { %v1337_v25 = vpack.c.bf16 %v1422_v57, %v1421_v58  ;;  %v581_v26 = vpop.xlane.xlu0 %580  ;;  %v592_v3 = vmul.f32 %v1453_v62, %v1829_v34 }
 0x584   :  { %1338 = vmatprep.subr.bf16.mxu0 %v1337_v25 }
 0x585   :  { %1340 = vmatpush3.bf16.msra.mxu0 %v1337_v25  ;;  %v1455_v4 = vpop.eup %1454 }
 0x586   :  { %1342 = vmatprep.subr.bf16.mxu0 %v1337_v25  ;;  %v578_v27 = vpop.xlane.xlu0 %577  ;;  %v1457_v7 = vpop.eup %1456  ;;  %v593_v9 = vmul.f32 %v1455_v4, %v1833_v39  ;;  %v992_v4 = vld [vmem:[%s1966_s9] sm:$0xff] }
 0x587   :  { %1460 = vrcp.f32 %v578_v27  ;;  %v594_v11 = vmul.f32 %v1457_v7, %v1835_v40  ;;  %v994_v7 = vld [vmem:[%s1966_s9 + $0x10] sm:$0xff] }
 0x588   :  { %1462 = vrcp.f32 %v581_v26 }
 0x589   :  { %1344 = vmatpush3.bf16.msra.mxu0 %v1337_v25  ;;  %v1459_v10 = vpop.eup %1458 }
 0x58a   :  { %v1425_v2 = vpop.permute.xlu0 %1424  ;;  %v595_v14 = vmul.f32 %v1459_v10, %v1443_v43  ;;  %v995_v10 = vld [vmem:[%s1966_s9 + $0x18] sm:$0xff] }
 0x58b   :  { %v1427_v6 = vunpack.i.h.bf16 %v1425_v2  ;;  %v1426_v59 = vunpack.i.l.bf16 %v1425_v2 }
 0x58d   :  { %v1345_v60 = vpack.c.bf16 %v1427_v6, %v1426_v59  ;;  %v1130_v59 = vld [vmem:[%s1964_s7] ss:$0 sm:$0xff] }
 0x58f   :  { %1346 = vmatprep.subr.bf16.mxu0 %v1345_v60 }
 0x590   :  { %1348 = vmatpush3.bf16.msra.mxu0 %v1345_v60 }
 0x591   :  { %1350 = vmatprep.subr.bf16.mxu0 %v1345_v60  ;;  %v1461_v12 = vpop.eup %1460 }
 0x592   :  { %v1463_v15 = vpop.eup %1462  ;;  %v596_v16 = vmul.f32 %v1461_v12, %v1447_v47  ;;  %v996_v12 = vld [vmem:[%s1966_s9 + $0x20] sm:$0xff] }
 0x593   :  { %v597_v8 = vmul.f32 %v1463_v15, %v1842_v45 }
 0x594   :  { %1352 = vmatpush3.bf16.msra.mxu0 %v1345_v60 }
 0x595   :  { %1354 = vmatprep.subr.bf16.mxu0 %v1353_v19 }
 0x597   :  { %1253 = vmatmul.mubr.msk.f32.vlgmr.msra.gmra.mrb[2].mxu0 %vm509_vm4, %v591_v63 }
 0x598   :  { %1255 = vmatprep.mubr.msk.f32.mxu0 %vm509_vm4, %v592_v3  ;;  %1356 = vmatpush3.bf16.msra.mxu0 %v1353_v19  ;;  %v993_v3 = vld [vmem:[%s1966_s9 + $0x8] sm:$0xff] }
 0x599   :  { %1358 = vmatprep.subr.bf16.mxu0 %v1357_v23 }
 0x59b   :  { %1256 = vmatmul.mubr.msk.f32.gmra.mrb[4].mxu0 %vm509_vm4, %v593_v9  ;;  %v1369_v9 = vpack.c.bf16 %v993_v3, %v992_v4 }
 0x59c   :  { %1258 = vmatprep.mubr.msk.f32.mxu0 %vm509_vm4, %v594_v11  ;;  %1360 = vmatpush3.bf16.msra.mxu0 %v1357_v23  ;;  %v1373_v11 = vpack.c.bf16 %v995_v10, %v994_v7 }
 0x59d   :  { %1370 = vmatprep.subr.bf16.mxu1 %v1369_v9 }
 0x59e   :  { %1372 = vmatpush3.bf16.msra.mxu1 %v1369_v9 }
 0x59f   :  { %1259 = vmatmul.mubr.msk.f32.gmra.mrb[6].mxu0 %vm509_vm4, %v595_v14  ;;  %v997_v14 = vld [vmem:[%s1966_s9 + $0x28] sm:$0xff]  ;;  %1374 = vmatprep.subr.bf16.mxu1 %v1373_v11 }
 0x5a0   :  { %1261 = vmatprep.mubr.msk.f32.mxu0 %vm509_vm4, %v596_v16  ;;  %v1377_v15 = vpack.c.bf16 %v997_v14, %v996_v12  ;;  %v998_v16 = vld [vmem:[%s1966_s9 + $0x30] sm:$0xff] }
 0x5a2   :  { %1376 = vmatpush3.bf16.msra.mxu1 %v1373_v11 }
 0x5a3   :  { %1262 = vmatmul.mubr.msk.f32.gmra.mrb[8].mxu0 %vm509_vm4, %v597_v8  ;;  %v999_v8 = vld [vmem:[%s1966_s9 + $0x38] sm:$0xff]  ;;  %1378 = vmatprep.subr.bf16.mxu1 %v1377_v15  ;;  %s1516_s9 = smov [#allocation2]  }
 0x5a4   :  { %v1381_v17 = vpack.c.bf16 %v999_v8, %v998_v16 }
 0x5a6   :  { %1380 = vmatpush3.bf16.msra.mxu1 %v1377_v15 }
 0x5a7   :  { %1382 = vmatprep.subr.bf16.mxu1 %v1381_v17 }
 0x5aa   :  { %1384 = vmatpush3.bf16.msra.mxu1 %v1381_v17 }
 0x66a   :  { %v1254_v20 = vpop.f32.mrb[2].mxu0 }
 0x66b   :  { %v700_v22 = vpop.f32.mrb[3].mxu0 }
 0x66e   :  { %v1257_v24 = vpop.f32.mrb[4].mxu0 }
 0x66f   :  { %743 = vrot.lane.b32.xlu1 %v1257_v24, %s1512_s22  ;;  %v710_v28 = vpop.f32.mrb[5].mxu0 }
 0x672   :  { %v1260_v30 = vpop.f32.mrb[6].mxu0 }
 0x673   :  { %741 = vrot.lane.b32.xlu1 %v710_v28, %s1512_s22  ;;  %v720_v31 = vpop.f32.mrb[7].mxu0 }
 0x676   :  { %v1263_v13 = vpop.f32.mrb[8].mxu0 }
 0x677   :  { %751 = vrot.lane.b32.xlu1 %v1260_v30, %s1513_s3  ;;  %v730_v32 = vpop.f32.mrb[9].mxu0 }
 0x678   :  { %757 = vrot.lane.b32.xlu0 %v730_v32, %s1514_s23 }
 0x67b   :  { %749 = vrot.lane.b32.xlu1 %v720_v31, %s1513_s3  ;;  %s1515_s3 = smov 64  }
 0x67f   :  { %759 = vrot.lane.b32.xlu1 %v1263_v13, %s1514_s23  ;;  %s1090_s23 = sshll.u32 %s1516_s9, 4  ;;  %s1091_s23 = int_to_ptr.vmem [resolvable:$true] %s1090_s23 }
 0x680   :  { %s1476_s6 = scalar_lea.vmem %s1091_s23, 256  ;;  %p1481_p1 = scmp.lt.s32.totalorder %s1091_s23, %s1091_s23 }
 0x681   :  { %p1477_p0 = scmp.ne.s32.totalorder %s1091_s23, %s1476_s6  ;;  %p1482_p2 = scmp.lt.s32.totalorder %s1476_s6, %s1476_s6 }
 0x683   :  { %p1483_p3 = por %p1482_p2, %p1481_p1 }
 0x685   :  { %p1484_p4 = pnand %p1483_p3, %p1477_p0 }
 0x6e1   :  { %v744_v33 = vpop.permute.xlu1 %743 }
 0x6e2   :  { %v764_v42 = vsel %vm347_vm2, %v1254_v20, %v744_v33 }
 0x6e5   :  { %v742_v34 = vpop.permute.xlu1 %741 }
 0x6e6   :  { %v763_v37 = vsel %vm347_vm2, %v700_v22, %v742_v34 }
 0x6e9   :  { %v752_v35 = vpop.permute.xlu1 %751 }
 0x6ea   :  { %v758_v39 = vpop.permute.xlu0 %757  ;;  %v767_v43 = vsel %vm765_vm6, %v764_v42, %v752_v35 }
 0x6ed   :  { %v750_v38 = vpop.permute.xlu1 %749 }
 0x6ee   :  { %v766_v40 = vsel %vm765_vm6, %v763_v37, %v750_v38 }
 0x6ef   :  { %v769_v41 = vsel %vm768_vm5, %v766_v40, %v758_v39 }
 0x6f0   :  { %1272 = vmatprep.mubr.msk.f32.mxu0 %vm41_vm0, %v769_v41 }
 0x6f1   :  { %v760_v44 = vpop.permute.xlu1 %759 }
 0x6f2   :  { %v770_v45 = vsel %vm768_vm5, %v767_v43, %v760_v44 }
 0x6f3   :  { %1273 = vmatmul.mubr.msk.f32.vlgmr.msra.gmra.mrb[10].mxu0 %vm41_vm0, %v770_v45 }
 0x7c6   :  { %v1274_v46 = vpop.f32.mrb[10].mxu0 }
 0x7c7   :  { %v1884_v47 = vadd.f32 %v1274_v46, %v1581_v1  ;;  %v847_v48 = vpop.f32.mrb[11].mxu0  ;;  %v883_v1 = vld [vmem:[%s1965_s8] sm:$0xff] }
 0x7c8   :  { %v1887_v36 = vadd.f32 %v847_v48, %v1576_v0  ;;  %v884_v0 = vld [vmem:[%s1965_s8 + $0x8] sm:$0xff] }
 0x7c9   :  { %v860_v49 = vmul.f32 %v1884_v47, %v1884_v47  ;;  %v1361_v53 = vpack.c.bf16 %v884_v0, %v883_v1 }
 0x7ca   :  { %v859_v50 = vmul.f32 %v1887_v36, %v1887_v36 }
 0x7cb   :  { %v864_v51 = vsel %vm41_vm0, %v860_v49, 0.0  ;;  %1362 = vmatprep.subr.bf16.mxu0 %v1361_v53 }
 0x7cc   :  { %865 = vadd.xlane.f32.xlu1 %v864_v51  ;;  %v861_v29 = vsel %vm41_vm0, %v859_v50, 0.0  ;;  %1364 = vmatpush3.bf16.msra.mxu0 %v1361_v53 }
 0x7cd   :  { %862 = vadd.xlane.f32.xlu0 %v861_v29  ;;  %1366 = vmatprep.subr.bf16.mxu0 %v1365_v55 }
 0x7d0   :  { %1368 = vmatpush3.bf16.msra.mxu0 %v1365_v55 }
 0x859   :  { %v866_v56 = vpop.xlane.xlu1 %865 }
 0x85a   :  { %v868_v57 = vmul.f32 0.03125, %v866_v56  ;;  %v863_v58 = vpop.xlane.xlu0 %862 }
 0x85b   :  { %v867_v25 = vmul.f32 0.03125, %v863_v58 }
 0x85c   :  { %v870_v26 = vadd.f32 1e-06, %v868_v57 }
 0x85d   :  { %v869_v27 = vadd.f32 1e-06, %v867_v25 }
 0x85e   :  { %1464 = vrsqrt.f32 %v870_v26 }
 0x85f   :  { %1466 = vrsqrt.f32 %v869_v27 }
 0x868   :  { %v1465_v2 = vpop.eup %1464 }
 0x869   :  { %v1467_v6 = vpop.eup %1466  ;;  %v874_v60 = vmul.f32 %v1465_v2, %v1884_v47 }
 0x86a   :  { %v873_v61 = vmul.f32 %v1467_v6, %v1887_v36 }
 0x86b   :  { %v882_v63 = vmul.f32 %v1130_v59, %v874_v60 }
 0x86c   :  { %v881_v62 = vmul.f32 %v1130_v59, %v873_v61 }
 0x86e   :  { %1283 = vmatprep.mubr.msk.f32.mxu0 %vm41_vm0, %v881_v62 }
 0x86f   :  { %1284 = vmatmul.mubr.msk.f32.vlgmr.msra.gmra.mrb[12].mxu0 %vm41_vm0, %v882_v63 }
 0x942   :  { %v1285_v18 = vpop.f32.mrb[12].mxu0 }
 0x943   :  { %986 = vrot.lane.b32.xlu1 %v1285_v18, %s1515_s3  ;;  %v959_v19 = vpop.f32.mrb[13].mxu0  ;;  %v1134_v5 = vmul.f32 -1.442695, %v1285_v18 }
 0x944   :  { %984 = vrot.lane.b32.xlu0 %v959_v19, %s1515_s3  ;;  %v1133_v20 = vmul.f32 -1.442695, %v959_v19 }
 0x946   :  { %1468 = vpow2.f32 %v1133_v20 }
 0x947   :  { %1470 = vpow2.f32 %v1134_v5 }
 0x950   :  { %v1469_v21 = vpop.eup %1468 }
 0x951   :  { %v1471_v22 = vpop.eup %1470  ;;  %v974_v23 = vadd.f32 1.0, %v1469_v21 }
 0x952   :  { %v975_v24 = vadd.f32 1.0, %v1471_v22 }
 0x953   :  { %1472 = vrcp.f32 %v974_v23 }
 0x954   :  { %1474 = vrcp.f32 %v975_v24 }
 0x95d   :  { %v1473_v28 = vpop.eup %1472 }
 0x95e   :  { %v1475_v30 = vpop.eup %1474  ;;  %v980_v31 = vmul.f32 %v1473_v28, %v959_v19 }
 0x95f   :  { %v981_v32 = vmul.f32 %v1475_v30, %v1285_v18 }
 0x9b5   :  { %v987_v13 = vpop.permute.xlu1 %986 }
 0x9b6   :  { %v985_v33 = vpop.permute.xlu0 %984  ;;  %v991_v35 = vmul.f32 %v987_v13, %v981_v32 }
 0x9b7   :  { %v990_v34 = vmul.f32 %v985_v33, %v980_v31 }
 0x9b9   :  { %1302 = vmatprep.mubr.msk.f32.mxu1 %vm509_vm4, %v990_v34 }
 0x9ba   :  { %1303 = vmatmul.mubr.msk.f32.vlgmr.msra.gmra.mrb[8].mxu1 %vm509_vm4, %v991_v35 }
 0xa8d   :  { %v1304_v37 = vpop.f32.mrb[8].mxu1 }
 0xa8e   :  { %v1082_v38 = vadd.f32 %v1304_v37, %v1884_v47  ;;  %v1072_v39 = vpop.f32.mrb[9].mxu1 }
 0xa8f   :  { %v1081_v40 = vadd.f32 %v1072_v39, %v1887_v36 }
 0xa90   :  { %1084 = vst.msk [vmem:[#allocation2 + $0x8] sm:$0xff] %vm41_vm0, %v1082_v38 }
 0xa91   :  { %1083 = vst.msk [vmem:[#allocation2] sm:$0xff] %vm41_vm0, %v1081_v40 }
 0xa92   :  { %1487 = shalt.err (!%p1484_p4)
}
 0xa93   :  { %s1488_s25 = scalar_lea.hbm %s1967_s10, 256 }
 0xa94   :  { %p1489_p5 = scmp.ne.s32.totalorder %s1967_s10, %s1488_s25  ;;  %p1492_p6 = scmp.lt.u32.totalorder %s1488_s25, %s1967_s10 }
 0xa96   :  { %p1494_p7 = pnand %p1492_p6, %p1489_p5 }
 0xa98   :  { %1497 = shalt.err (!%p1494_p7)
}
 0xa99   :  { %s1517_s28 = smov 128  }
 0xa9a   :  { %1096 = dma.vmem_to_hbm [thread:$0]  %s1091_s23, 256, %s1967_s10, [#allocation3], %s1517_s28, %s1517_s28, %s1512_s22  }
 0xa9b   :  { %1498 = dma.done.wait [#allocation3], 256  }
 0xa9c   :  { %1499 = vsyncadd [#allocation3], 4294967040 }
 0xa9d   :  { %1100 = vsyncpa [#allocation3], 1 }

</bundles_post_ra>
